<compile_context>
chip_gen: v6e
topology: v6e:2x2x1
jax: 0.10.0
libtpu: 0.0.40
codegen_flags: <defaults>
</compile_context>

<pallas_src>
import functools

import jax
import jax.numpy as jnp
from jax.experimental import pallas as pl
from jax.experimental.pallas import tpu as pltpu


def _round_up(x, m):
    return ((x + m - 1) // m) * m


def _vmem_capacity_bytes():
    try:
        return int(pltpu.get_tpu_info().vmem_capacity_bytes)
    except Exception:
        return 64 << 20  # conservative default (v7x per-core VMEM)


def _is_v5e():
    try:
        kind = jax.devices()[0].device_kind.lower()
    except Exception:
        return False
    return ("v5e" in kind) or ("v5 lite" in kind) or ("v5litepod" in kind)


def prenorm_kernel(x_ref, w_ref, b_ref, o_ref, *, eps):
    # x_ref: (nb, C, T)  w_ref: (C_out, C_in)  b_ref: (C_out, 1)  o_ref: (nb, C_out, T)
    w = w_ref[...]
    b = b_ref[...]
    nb = x_ref.shape[0]
    for i in range(nb):  # nb is small (<= 8) and static; per-row 2-D tiles keep layouts clean
        x = x_ref[i].astype(jnp.float32)                  # (C, T)
        # Channel LayerNorm (biased variance, like torch.var(unbiased=False)).
        mean = jnp.mean(x, axis=0, keepdims=True)         # (1, T) sublane reduction
        xc = x - mean
        var = jnp.mean(xc * xc, axis=0, keepdims=True)    # (1, T)
        xn = xc * jax.lax.rsqrt(var + eps)                # (C, T); gain folded into w
        if w.dtype != jnp.float32:
            xn = xn.astype(w.dtype)                       # bf16 MXU inputs
        # fn: 1x1 conv == per-pixel channel matmul + bias, output kept channel-major.
        y = jnp.dot(w, xn, preferred_element_type=jnp.float32) + b
        o_ref[i] = y.astype(o_ref.dtype)


def prenorm(x_nchw, g, w, b, *, target_tile_bytes=2 << 20):
    """PreNorm(dim, Conv2d(dim, dim, 1)) forward.

    x_nchw: (N, C, H, W); g: (C,) LayerNorm gain; w: (C_in, C_out); b: (C_out,).
    """
    N, C, H, W = x_nchw.shape
    HW = H * W
    # Match the given PyTorch LayerNorm: eps = 1e-5 for float32, 1e-3 otherwise.
    eps = 1e-5 if x_nchw.dtype == jnp.float32 else 1e-3

    x3 = x_nchw.reshape(N, C, HW)  # contiguity-preserving collapse, no transpose
    itemsize = jnp.dtype(x_nchw.dtype).itemsize

    # bf16 MXU inputs once the contraction is large enough to matter; v5e's MXU
    # becomes the binding unit earlier, so lower its threshold.
    use_bf16 = C >= (128 if _is_v5e() else 256)
    w_dtype = jnp.bfloat16 if use_bf16 else jnp.float32
    w_itemsize = jnp.dtype(w_dtype).itemsize

    # ---- C-aware tile sizing (~target_tile_bytes per activation tile) ----
    hw128 = _round_up(HW, 128)
    cols = _round_up(max(1, target_tile_bytes // max(1, C * itemsize)), 128)
    cols = min(cols, 8192)
    if cols >= hw128:
        # Whole HW fits in one tile: use the exact (full-dim) extent -> no padded
        # columns at all; amortize per-step overhead over several batch rows.
        lane_tile = HW
        nb = max(1, min(N, 8, target_tile_bytes // max(1, C * HW * itemsize)))
    else:
        lane_tile = cols  # multiple of 128
        nb = 1

    # ---- generation-aware VMEM budget ----
    vmem_cap = _vmem_capacity_bytes()
    budget = max(16 << 20, vmem_cap - (16 << 20))  # ~48 MiB on v7x, ~112 MiB on v5e/v6e

    def vmem_estimate(nb_, cols_):
        cols_pad = _round_up(cols_, 128)
        act = nb_ * C * cols_pad * itemsize           # one activation tile
        work = 3 * C * cols_pad * 4                   # f32 working copies in-kernel
        wgt = C * C * w_itemsize                      # single-buffered weight
        bias = C * 128 * 4
        return 2 * 2 * act + wgt + bias + work + (2 << 20)

    while vmem_estimate(nb, lane_tile) > budget and (nb > 1 or lane_tile > 128):
        if nb > 1:
            nb = max(1, nb // 2)
        else:
            lane_tile = max(128, _round_up(lane_tile // 2, 128))

    vmem_limit = int(min(max(vmem_estimate(nb, lane_tile), 16 << 20), budget))

    grid = (pl.cdiv(N, nb), pl.cdiv(HW, lane_tile))

    # Fold the LayerNorm gain into the conv weight (one-time, param-sized) and
    # pre-cast it to the MXU dtype (no per-tile convert, half the weight DMA if bf16).
    w_fold = (g.reshape(C, 1) * w).T.astype(w_dtype)   # (C_out, C_in)
    b2 = b.reshape(C, 1).astype(jnp.float32)

    kernel = functools.partial(prenorm_kernel, eps=eps)
    out_shape = jax.ShapeDtypeStruct((N, C, HW), x_nchw.dtype)

    def run(const_spec_kwargs):
        act_in = pl.BlockSpec((nb, C, lane_tile), lambda n, t: (n, 0, t))
        act_out = pl.BlockSpec((nb, C, lane_tile), lambda n, t: (n, 0, t))
        # Weight/bias are grid-invariant; single-buffer them to save VMEM.
        w_spec = pl.BlockSpec((C, C), lambda n, t: (0, 0), **const_spec_kwargs)
        b_spec = pl.BlockSpec((C, 1), lambda n, t: (0, 0), **const_spec_kwargs)
        return pl.pallas_call(
            kernel,
            out_shape=out_shape,
            grid_spec=pltpu.PrefetchScalarGridSpec(
                num_scalar_prefetch=0,
                grid=grid,
                in_specs=[act_in, w_spec, b_spec],
                out_specs=act_out,
            ),
            compiler_params=pltpu.CompilerParams(
                dimension_semantics=("parallel", "parallel"),
                vmem_limit_bytes=vmem_limit,
            ),
        )(x3, w_fold, b2)

    try:
        out3 = run({"pipeline_mode": pl.Buffered(1)})
    except Exception:
        # Fallback if single-buffered pipeline_mode is unsupported on this JAX version.
        out3 = run({})

    return out3.reshape(N, C, H, W)


def prenorm_reference(x_nchw, g, w, b):
    """Plain-JAX reference matching the PyTorch semantics."""
    eps = 1e-5 if x_nchw.dtype == jnp.float32 else 1e-3
    mean = jnp.mean(x_nchw, axis=1, keepdims=True)
    var = jnp.mean((x_nchw - mean) ** 2, axis=1, keepdims=True)
    xn = (x_nchw - mean) * jax.lax.rsqrt(var + eps) * g.reshape(1, -1, 1, 1)
    # 1x1 conv: out[n, o, h, w] = sum_c xn[n, c, h, w] * w[c, o] + b[o]
    y = jnp.einsum("nchw,co->nohw", xn, w) + b.reshape(1, -1, 1, 1)
    return y


if __name__ == "__main__":
    key = jax.random.PRNGKey(0)

    # --- test 1: small f32 path (C < bf16 threshold) ---
    N, C, H, W = 2, 8, 16, 16
    kx, kg, kw, kb, k2x, k2g, k2w, k2b = jax.random.split(key, 8)
    x = jax.random.normal(kx, (N, C, H, W), dtype=jnp.float32)
    g = 1.0 + 0.1 * jax.random.normal(kg, (C,), dtype=jnp.float32)
    w = jax.random.normal(kw, (C, C), dtype=jnp.float32) * 0.1   # (in, out)
    b = jax.random.normal(kb, (C,), dtype=jnp.float32) * 0.1

    out = jax.block_until_ready(prenorm(x, g, w, b))
    ref = prenorm_reference(x, g, w, b)
    assert out.shape == (N, C, H, W)
    assert jnp.max(jnp.abs(out - ref)) < 1e-4

    # --- test 2: bf16 MXU path (C >= 256 on all generations) ---
    N2, C2, H2, W2 = 1, 256, 8, 8
    x2 = jax.random.normal(k2x, (N2, C2, H2, W2), dtype=jnp.float32)
    g2 = 1.0 + 0.1 * jax.random.normal(k2g, (C2,), dtype=jnp.float32)
    w2 = jax.random.normal(k2w, (C2, C2), dtype=jnp.float32) * 0.05
    b2 = jax.random.normal(k2b, (C2,), dtype=jnp.float32) * 0.1

    out2 = jax.block_until_ready(prenorm(x2, g2, w2, b2))
    ref2 = prenorm_reference(x2, g2, w2, b2)
    assert out2.shape == (N2, C2, H2, W2)
    assert jnp.max(jnp.abs(out2 - ref2)) < 1e-1  # bf16 matmul tolerance

    print("KERNEL_OK")
</pallas_src>

<mosaic_0001>
module attributes {stable_mosaic.version = 11 : i64} {
  func.func @prenorm_kernel(%arg0: i32, %arg1: i32, %arg2: memref<2x8x256xf32, #tpu.memory_space<vmem>>, %arg3: memref<8x8xf32, #tpu.memory_space<vmem>>, %arg4: memref<8x1xf32, #tpu.memory_space<vmem>>, %arg5: memref<2x8x256xf32, #tpu.memory_space<vmem>>) attributes {dimension_semantics = [#tpu.dimension_semantics<parallel>, #tpu.dimension_semantics<parallel>], iteration_bounds = array<i64: 1, 1>, scalar_prefetch = 0 : i64, scratch_operands = 0 : i64, tpu.core_type = #tpu.core_type<tc>, window_params = [{transform_indices = @transform_0, window_bounds = array<i64: 2, 8, 256>}, {pipeline_mode = #tpu.pipeline_mode<synchronous>, transform_indices = @transform_1, window_bounds = array<i64: 8, 8>}, {pipeline_mode = #tpu.pipeline_mode<synchronous>, transform_indices = @transform_2, window_bounds = array<i64: 8, 1>}, {transform_indices = @transform_3, window_bounds = array<i64: 2, 8, 256>}]} {
    %c0 = arith.constant 0 : index
    %c0_0 = arith.constant 0 : index
    %0 = vector.load %arg3[%c0, %c0_0] : memref<8x8xf32, #tpu.memory_space<vmem>>, vector<8x8xf32>
    %c0_1 = arith.constant 0 : index
    %c0_2 = arith.constant 0 : index
    %1 = vector.load %arg4[%c0_1, %c0_2] : memref<8x1xf32, #tpu.memory_space<vmem>>, vector<8x1xf32>
    %c0_3 = arith.constant 0 : index
    %c0_4 = arith.constant 0 : index
    %c0_5 = arith.constant 0 : index
    %2 = vector.load %arg2[%c0_3, %c0_4, %c0_5] : memref<2x8x256xf32, #tpu.memory_space<vmem>>, vector<1x8x256xf32>
    %3 = vector.shape_cast %2 : vector<1x8x256xf32> to vector<8x256xf32>
    %cst = arith.constant dense<0.000000e+00> : vector<256xf32>
    %4 = vector.multi_reduction <add>, %3, %cst [0] : vector<8x256xf32> to vector<256xf32>
    %5 = vector.shape_cast %4 : vector<256xf32> to vector<1x256xf32>
    %cst_6 = arith.constant 8.000000e+00 : f32
    %6 = vector.broadcast %cst_6 : f32 to vector<1x256xf32>
    %7 = arith.divf %5, %6 : vector<1x256xf32>
    %8 = vector.broadcast %7 : vector<1x256xf32> to vector<8x256xf32>
    %9 = arith.subf %3, %8 : vector<8x256xf32>
    %10 = arith.mulf %9, %9 : vector<8x256xf32>
    %cst_7 = arith.constant dense<0.000000e+00> : vector<256xf32>
    %11 = vector.multi_reduction <add>, %10, %cst_7 [0] : vector<8x256xf32> to vector<256xf32>
    %12 = vector.shape_cast %11 : vector<256xf32> to vector<1x256xf32>
    %cst_8 = arith.constant 8.000000e+00 : f32
    %13 = vector.broadcast %cst_8 : f32 to vector<1x256xf32>
    %14 = arith.divf %12, %13 : vector<1x256xf32>
    %cst_9 = arith.constant 9.99999974E-6 : f32
    %15 = vector.broadcast %cst_9 : f32 to vector<1x256xf32>
    %16 = arith.addf %14, %15 : vector<1x256xf32>
    %17 = math.rsqrt %16 : vector<1x256xf32>
    %18 = vector.broadcast %17 : vector<1x256xf32> to vector<8x256xf32>
    %19 = arith.mulf %9, %18 : vector<8x256xf32>
    %cst_10 = arith.constant dense<0.000000e+00> : vector<8x256xf32>
    %20 = tpu.matmul %0, %19, %cst_10 {dimension_numbers = #tpu.dot_dimension_numbers<[1], [0], [0], [1], [0, 0, 1, 1], [], []>} : vector<8x8xf32>, vector<8x256xf32>, vector<8x256xf32> -> vector<8x256xf32>
    %21 = vector.broadcast %1 : vector<8x1xf32> to vector<8x256xf32>
    %22 = arith.addf %20, %21 : vector<8x256xf32>
    %c0_11 = arith.constant 0 : index
    %c0_12 = arith.constant 0 : index
    %c0_13 = arith.constant 0 : index
    %23 = vector.load %arg5[%c0_11, %c0_12, %c0_13] : memref<2x8x256xf32, #tpu.memory_space<vmem>>, vector<1x8x256xf32>
    %24 = vector.shape_cast %23 : vector<1x8x256xf32> to vector<8x256xf32>
    %25 = vector.shape_cast %22 : vector<8x256xf32> to vector<1x8x256xf32>
    tpu.vector_store %arg5[%c0_11, %c0_12, %c0_13], %25 {strides = array<i32>} : memref<2x8x256xf32, #tpu.memory_space<vmem>>, vector<1x8x256xf32>,
    %c1 = arith.constant 1 : index
    %c0_14 = arith.constant 0 : index
    %c0_15 = arith.constant 0 : index
    %26 = vector.load %arg2[%c1, %c0_14, %c0_15] : memref<2x8x256xf32, #tpu.memory_space<vmem>>, vector<1x8x256xf32>
    %27 = vector.shape_cast %26 : vector<1x8x256xf32> to vector<8x256xf32>
    %cst_16 = arith.constant dense<0.000000e+00> : vector<256xf32>
    %28 = vector.multi_reduction <add>, %27, %cst_16 [0] : vector<8x256xf32> to vector<256xf32>
    %29 = vector.shape_cast %28 : vector<256xf32> to vector<1x256xf32>
    %cst_17 = arith.constant 8.000000e+00 : f32
    %30 = vector.broadcast %cst_17 : f32 to vector<1x256xf32>
    %31 = arith.divf %29, %30 : vector<1x256xf32>
    %32 = vector.broadcast %31 : vector<1x256xf32> to vector<8x256xf32>
    %33 = arith.subf %27, %32 : vector<8x256xf32>
    %34 = arith.mulf %33, %33 : vector<8x256xf32>
    %cst_18 = arith.constant dense<0.000000e+00> : vector<256xf32>
    %35 = vector.multi_reduction <add>, %34, %cst_18 [0] : vector<8x256xf32> to vector<256xf32>
    %36 = vector.shape_cast %35 : vector<256xf32> to vector<1x256xf32>
    %cst_19 = arith.constant 8.000000e+00 : f32
    %37 = vector.broadcast %cst_19 : f32 to vector<1x256xf32>
    %38 = arith.divf %36, %37 : vector<1x256xf32>
    %cst_20 = arith.constant 9.99999974E-6 : f32
    %39 = vector.broadcast %cst_20 : f32 to vector<1x256xf32>
    %40 = arith.addf %38, %39 : vector<1x256xf32>
    %41 = math.rsqrt %40 : vector<1x256xf32>
    %42 = vector.broadcast %41 : vector<1x256xf32> to vector<8x256xf32>
    %43 = arith.mulf %33, %42 : vector<8x256xf32>
    %cst_21 = arith.constant dense<0.000000e+00> : vector<8x256xf32>
    %44 = tpu.matmul %0, %43, %cst_21 {dimension_numbers = #tpu.dot_dimension_numbers<[1], [0], [0], [1], [0, 0, 1, 1], [], []>} : vector<8x8xf32>, vector<8x256xf32>, vector<8x256xf32> -> vector<8x256xf32>
    %45 = vector.broadcast %1 : vector<8x1xf32> to vector<8x256xf32>
    %46 = arith.addf %44, %45 : vector<8x256xf32>
    %c1_22 = arith.constant 1 : index
    %c0_23 = arith.constant 0 : index
    %c0_24 = arith.constant 0 : index
    %47 = vector.load %arg5[%c1_22, %c0_23, %c0_24] : memref<2x8x256xf32, #tpu.memory_space<vmem>>, vector<1x8x256xf32>
    %48 = vector.shape_cast %47 : vector<1x8x256xf32> to vector<8x256xf32>
    %49 = vector.shape_cast %46 : vector<8x256xf32> to vector<1x8x256xf32>
    tpu.vector_store %arg5[%c1_22, %c0_23, %c0_24], %49 {strides = array<i32>} : memref<2x8x256xf32, #tpu.memory_space<vmem>>, vector<1x8x256xf32>,
    return
  }
  func.func @transform_0(%arg0: i32, %arg1: i32) -> (i32, i32, i32) {
    %c0_i32 = arith.constant 0 : i32
    %c0_i32_0 = arith.constant 0 : i32
    return %arg0, %c0_i32, %arg1 : i32, i32, i32
  }
  func.func @transform_1(%arg0: i32, %arg1: i32) -> (i32, i32) {
    %c0_i32 = arith.constant 0 : i32
    %c0_i32_0 = arith.constant 0 : i32
    %c0_i32_1 = arith.constant 0 : i32
    return %c0_i32, %c0_i32_0 : i32, i32
  }
  func.func @transform_2(%arg0: i32, %arg1: i32) -> (i32, i32) {
    %c0_i32 = arith.constant 0 : i32
    %c0_i32_0 = arith.constant 0 : i32
    %c0_i32_1 = arith.constant 0 : i32
    return %c0_i32, %c0_i32_0 : i32, i32
  }
  func.func @transform_3(%arg0: i32, %arg1: i32) -> (i32, i32, i32) {
    %c0_i32 = arith.constant 0 : i32
    %c0_i32_0 = arith.constant 0 : i32
    return %arg0, %c0_i32, %arg1 : i32, i32, i32
  }
}

module attributes {stable_mosaic.version = 11 : i64} {
  func.func @prenorm_kernel(%arg0: i32, %arg1: i32, %arg2: memref<2x8x256xf32, #tpu.memory_space<vmem>>, %arg3: memref<8x8xf32, #tpu.memory_space<vmem>>, %arg4: memref<8x1xf32, #tpu.memory_space<vmem>>, %arg5: memref<2x8x256xf32, #tpu.memory_space<vmem>>) attributes {dimension_semantics = [#tpu.dimension_semantics<parallel>, #tpu.dimension_semantics<parallel>], iteration_bounds = array<i64: 1, 1>, scalar_prefetch = 0 : i64, scratch_operands = 0 : i64, tpu.core_type = #tpu.core_type<tc>, window_params = [{transform_indices = @transform_0, window_bounds = array<i64: 2, 8, 256>}, {pipeline_mode = #tpu.pipeline_mode<synchronous>, transform_indices = @transform_1, window_bounds = array<i64: 8, 8>}, {pipeline_mode = #tpu.pipeline_mode<synchronous>, transform_indices = @transform_2, window_bounds = array<i64: 8, 1>}, {transform_indices = @transform_3, window_bounds = array<i64: 2, 8, 256>}]} {
    %c0 = arith.constant 0 : index
    %c0_0 = arith.constant 0 : index
    %0 = vector.load %arg3[%c0, %c0_0] : memref<8x8xf32, #tpu.memory_space<vmem>>, vector<8x8xf32>
    %c0_1 = arith.constant 0 : index
    %c0_2 = arith.constant 0 : index
    %1 = vector.load %arg4[%c0_1, %c0_2] : memref<8x1xf32, #tpu.memory_space<vmem>>, vector<8x1xf32>
    %c0_3 = arith.constant 0 : index
    %c0_4 = arith.constant 0 : index
    %c0_5 = arith.constant 0 : index
    %2 = vector.load %arg2[%c0_3, %c0_4, %c0_5] : memref<2x8x256xf32, #tpu.memory_space<vmem>>, vector<1x8x256xf32>
    %3 = vector.shape_cast %2 : vector<1x8x256xf32> to vector<8x256xf32>
    %cst = arith.constant dense<0.000000e+00> : vector<256xf32>
    %4 = vector.multi_reduction <add>, %3, %cst [0] : vector<8x256xf32> to vector<256xf32>
    %5 = vector.shape_cast %4 : vector<256xf32> to vector<1x256xf32>
    %cst_6 = arith.constant 8.000000e+00 : f32
    %6 = vector.broadcast %cst_6 : f32 to vector<1x256xf32>
    %7 = arith.divf %5, %6 : vector<1x256xf32>
    %8 = vector.broadcast %7 : vector<1x256xf32> to vector<8x256xf32>
    %9 = arith.subf %3, %8 : vector<8x256xf32>
    %10 = arith.mulf %9, %9 : vector<8x256xf32>
    %cst_7 = arith.constant dense<0.000000e+00> : vector<256xf32>
    %11 = vector.multi_reduction <add>, %10, %cst_7 [0] : vector<8x256xf32> to vector<256xf32>
    %12 = vector.shape_cast %11 : vector<256xf32> to vector<1x256xf32>
    %cst_8 = arith.constant 8.000000e+00 : f32
    %13 = vector.broadcast %cst_8 : f32 to vector<1x256xf32>
    %14 = arith.divf %12, %13 : vector<1x256xf32>
    %cst_9 = arith.constant 9.99999974E-6 : f32
    %15 = vector.broadcast %cst_9 : f32 to vector<1x256xf32>
    %16 = arith.addf %14, %15 : vector<1x256xf32>
    %17 = math.rsqrt %16 : vector<1x256xf32>
    %18 = vector.broadcast %17 : vector<1x256xf32> to vector<8x256xf32>
    %19 = arith.mulf %9, %18 : vector<8x256xf32>
    %cst_10 = arith.constant dense<0.000000e+00> : vector<8x256xf32>
    %20 = tpu.matmul %0, %19, %cst_10 {dimension_numbers = #tpu.dot_dimension_numbers<[1], [0], [0], [1], [0, 0, 1, 1], [], []>} : vector<8x8xf32>, vector<8x256xf32>, vector<8x256xf32> -> vector<8x256xf32>
    %21 = vector.broadcast %1 : vector<8x1xf32> to vector<8x256xf32>
    %22 = arith.addf %20, %21 : vector<8x256xf32>
    %c0_11 = arith.constant 0 : index
    %c0_12 = arith.constant 0 : index
    %c0_13 = arith.constant 0 : index
    %23 = vector.load %arg5[%c0_11, %c0_12, %c0_13] : memref<2x8x256xf32, #tpu.memory_space<vmem>>, vector<1x8x256xf32>
    %24 = vector.shape_cast %23 : vector<1x8x256xf32> to vector<8x256xf32>
    %25 = vector.shape_cast %22 : vector<8x256xf32> to vector<1x8x256xf32>
    tpu.vector_store %arg5[%c0_11, %c0_12, %c0_13], %25 {strides = array<i32>} : memref<2x8x256xf32, #tpu.memory_space<vmem>>, vector<1x8x256xf32>,
    %c1 = arith.constant 1 : index
    %c0_14 = arith.constant 0 : index
    %c0_15 = arith.constant 0 : index
    %26 = vector.load %arg2[%c1, %c0_14, %c0_15] : memref<2x8x256xf32, #tpu.memory_space<vmem>>, vector<1x8x256xf32>
    %27 = vector.shape_cast %26 : vector<1x8x256xf32> to vector<8x256xf32>
    %cst_16 = arith.constant dense<0.000000e+00> : vector<256xf32>
    %28 = vector.multi_reduction <add>, %27, %cst_16 [0] : vector<8x256xf32> to vector<256xf32>
    %29 = vector.shape_cast %28 : vector<256xf32> to vector<1x256xf32>
    %cst_17 = arith.constant 8.000000e+00 : f32
    %30 = vector.broadcast %cst_17 : f32 to vector<1x256xf32>
    %31 = arith.divf %29, %30 : vector<1x256xf32>
    %32 = vector.broadcast %31 : vector<1x256xf32> to vector<8x256xf32>
    %33 = arith.subf %27, %32 : vector<8x256xf32>
    %34 = arith.mulf %33, %33 : vector<8x256xf32>
    %cst_18 = arith.constant dense<0.000000e+00> : vector<256xf32>
    %35 = vector.multi_reduction <add>, %34, %cst_18 [0] : vector<8x256xf32> to vector<256xf32>
    %36 = vector.shape_cast %35 : vector<256xf32> to vector<1x256xf32>
    %cst_19 = arith.constant 8.000000e+00 : f32
    %37 = vector.broadcast %cst_19 : f32 to vector<1x256xf32>
    %38 = arith.divf %36, %37 : vector<1x256xf32>
    %cst_20 = arith.constant 9.99999974E-6 : f32
    %39 = vector.broadcast %cst_20 : f32 to vector<1x256xf32>
    %40 = arith.addf %38, %39 : vector<1x256xf32>
    %41 = math.rsqrt %40 : vector<1x256xf32>
    %42 = vector.broadcast %41 : vector<1x256xf32> to vector<8x256xf32>
    %43 = arith.mulf %33, %42 : vector<8x256xf32>
    %cst_21 = arith.constant dense<0.000000e+00> : vector<8x256xf32>
    %44 = tpu.matmul %0, %43, %cst_21 {dimension_numbers = #tpu.dot_dimension_numbers<[1], [0], [0], [1], [0, 0, 1, 1], [], []>} : vector<8x8xf32>, vector<8x256xf32>, vector<8x256xf32> -> vector<8x256xf32>
    %45 = vector.broadcast %1 : vector<8x1xf32> to vector<8x256xf32>
    %46 = arith.addf %44, %45 : vector<8x256xf32>
    %c1_22 = arith.constant 1 : index
    %c0_23 = arith.constant 0 : index
    %c0_24 = arith.constant 0 : index
    %47 = vector.load %arg5[%c1_22, %c0_23, %c0_24] : memref<2x8x256xf32, #tpu.memory_space<vmem>>, vector<1x8x256xf32>
    %48 = vector.shape_cast %47 : vector<1x8x256xf32> to vector<8x256xf32>
    %49 = vector.shape_cast %46 : vector<8x256xf32> to vector<1x8x256xf32>
    tpu.vector_store %arg5[%c1_22, %c0_23, %c0_24], %49 {strides = array<i32>} : memref<2x8x256xf32, #tpu.memory_space<vmem>>, vector<1x8x256xf32>,
    return
  }
  func.func @transform_0(%arg0: i32, %arg1: i32) -> (i32, i32, i32) {
    %c0_i32 = arith.constant 0 : i32
    %c0_i32_0 = arith.constant 0 : i32
    return %arg0, %c0_i32, %arg1 : i32, i32, i32
  }
  func.func @transform_1(%arg0: i32, %arg1: i32) -> (i32, i32) {
    %c0_i32 = arith.constant 0 : i32
    %c0_i32_0 = arith.constant 0 : i32
    %c0_i32_1 = arith.constant 0 : i32
    return %c0_i32, %c0_i32_0 : i32, i32
  }
  func.func @transform_2(%arg0: i32, %arg1: i32) -> (i32, i32) {
    %c0_i32 = arith.constant 0 : i32
    %c0_i32_0 = arith.constant 0 : i32
    %c0_i32_1 = arith.constant 0 : i32
    return %c0_i32, %c0_i32_0 : i32, i32
  }
  func.func @transform_3(%arg0: i32, %arg1: i32) -> (i32, i32, i32) {
    %c0_i32 = arith.constant 0 : i32
    %c0_i32_0 = arith.constant 0 : i32
    return %arg0, %c0_i32, %arg1 : i32, i32, i32
  }
}

</mosaic_0001>

<bundles_post_ra>
// kernel: tpu_custom_call.1
= control target key start
LH: loop header
LB: loop body
LE: loop exit
PB: predicated region body
PF: predicated region fallthrough
CT: control target
= control target key end

     0   :  { %8 = vsyncpa [#allocation3], 0  ;;  %s391_s0 = inlined_call_operand.hbm [shape: f32[2,8,256], index: 0, kind: input, shape index: {}]   ;;  %s392_s1 = inlined_call_operand.vmem [shape: f32[8,8], index: 1, kind: input, shape index: {}]   ;;  %s393_s2 = inlined_call_operand.vmem [shape: f32[8,1], index: 2, kind: input, shape index: {}]   ;;  %s394_s3 = inlined_call_operand.hbm [shape: f32[2,8,256], index: 3, kind: output, shape index: {}]  }
   0x1   :  { %9 = vsyncpa [#allocation4], 0  ;;  %s347_s12 = smov [#allocation2]  }
   0x2   :  { %s15_s13 = sshll.u32 %s347_s12, 4  ;;  %s16_s13 = int_to_ptr.vmem [resolvable:$true] %s15_s13 }
   0x3   :  { %s311_s14 = scalar_lea.vmem %s16_s13, 512  ;;  %p316_p1 = scmp.lt.s32.totalorder %s16_s13, %s16_s13 }
   0x4   :  { %p312_p0 = scmp.ne.s32.totalorder %s16_s13, %s311_s14  ;;  %p317_p2 = scmp.lt.s32.totalorder %s311_s14, %s311_s14 }
   0x6   :  { %p318_p3 = por %p317_p2, %p316_p1 }
   0x8   :  { %p319_p4 = pnand %p318_p3, %p312_p0 }
   0xa   :  { %322 = shalt.err (!%p319_p4)
}
   0xb   :  { %s348_s15 = smov 256   ;;  %s349_s16 = smov 16  }
   0xc   :  { %21 = dma.hbm_to_vmem [thread:$0]  %s391_s0, 512, %s16_s13, [#allocation3], %s348_s15, %s348_s15, %s349_s16  }
   0xd   :  { %343 = dma.done.wait [#allocation3], 512  }
   0xe   :  { %344 = vsyncadd [#allocation3], 4294966784  ;;  %v350_v0 = vmov 0.0   ;;  %v351_v1 = vmov 0   ;;  %v32_v2 = vld [vmem:[#allocation2 + $0x8] sm:$0xff]  ;;  %v156_v3 = vld [vmem:[#allocation2 + $0x18] sm:$0xff] }
   0xf   :  { %145 = vmatprep.mubr.f32.mxu0 %v350_v0  ;;  %259 = vmatprep.mubr.f32.mxu1 %v350_v0  ;;  %v31_v4 = vld [vmem:[#allocation2] sm:$0xff]  ;;  %v39_v5 = vrot.slane %v32_v2, 4  ;;  %v163_v6 = vrot.slane %v156_v3, 4  ;;  %v155_v8 = vld [vmem:[#allocation2 + $0x10] sm:$0xff]  ;;  %vm77_vm0 = vcmask 64512   ;;  %s352_s21 = smov [#allocation5]  }
  0x10   :  { %294 = vset.pattern.permute.xlu0 %v351_v1  ;;  %v33_v7 = vrot.slane %v31_v4, 4  ;;  %v30_v9 = vld [vmem:[%s393_s2] sm:$0xff]  ;;  %v157_v10 = vrot.slane %v155_v8, 4  ;;  %s274_s22 = sshll.u32 %s352_s21, 4  ;;  %s275_s22 = int_to_ptr.vmem [resolvable:$true] %s274_s22 }
  0x11   :  { %74 = vperm.xlu0 %294, %v30_v9   ;;  %v40_v11 = vadd.f32 %v39_v5, %v32_v2  ;;  %v164_v12 = vadd.f32 %v163_v6, %v156_v3  ;;  %p328_p6 = scmp.lt.s32.totalorder %s275_s22, %s275_s22 }
  0x12   :  { %v34_v13 = vadd.f32 %v33_v7, %v31_v4  ;;  %v158_v14 = vadd.f32 %v157_v10, %v155_v8 }
  0x13   :  { %v41_v15 = vrot.slane %v40_v11, 2  ;;  %v165_v16 = vrot.slane %v164_v12, 2 }
  0x14   :  { %v35_v17 = vrot.slane %v34_v13, 2  ;;  %v159_v18 = vrot.slane %v158_v14, 2 }
  0x15   :  { %v42_v19 = vadd.f32 %v41_v15, %v40_v11  ;;  %v166_v20 = vadd.f32 %v165_v16, %v164_v12 }
  0x16   :  { %v36_v21 = vadd.f32 %v35_v17, %v34_v13  ;;  %v160_v22 = vadd.f32 %v159_v18, %v158_v14  ;;  %v29_v18 = vld [vmem:[%s392_s1] sm:$0xff]  ;;  %s323_s1 = scalar_lea.vmem %s275_s22, 512 }
  0x17   :  { %v43_v23 = vrot.slane %v42_v19, 1  ;;  %v167_v24 = vrot.slane %v166_v20, 1  ;;  %p324_p5 = scmp.ne.s32.totalorder %s275_s22, %s323_s1  ;;  %p329_p7 = scmp.lt.s32.totalorder %s323_s1, %s323_s1 }
  0x18   :  { %v37_v25 = vrot.slane %v36_v21, 1  ;;  %v161_v26 = vrot.slane %v160_v22, 1 }
  0x19   :  { %v44_v27 = vadd.f32 %v43_v23, %v42_v19  ;;  %v168_v28 = vadd.f32 %v167_v24, %v166_v20  ;;  %p330_p8 = por %p329_p7, %p328_p6 }
  0x1a   :  { %v38_v29 = vadd.f32 %v37_v25, %v36_v21  ;;  %v162_v30 = vadd.f32 %v161_v26, %v160_v22 }
  0x1b   :  { %v47_v31 = vmul.f32 0.125, %v44_v27  ;;  %v170_v32 = vmul.f32 0.125, %v168_v28  ;;  %p331_p9 = pnand %p330_p8, %p324_p5 }
  0x1c   :  { %v46_v33 = vmul.f32 0.125, %v38_v29  ;;  %v169_v34 = vmul.f32 0.125, %v162_v30 }
  0x1d   :  { %v49_v35 = vsub.f32 %v32_v2, %v47_v31  ;;  %v172_v36 = vsub.f32 %v156_v3, %v170_v32 }
  0x1e   :  { %v48_v37 = vsub.f32 %v31_v4, %v46_v33  ;;  %v171_v38 = vsub.f32 %v155_v8, %v169_v34 }
  0x1f   :  { %v51_v39 = vmul.f32 %v49_v35, %v49_v35  ;;  %v174_v40 = vmul.f32 %v172_v36, %v172_v36 }
  0x20   :  { %v50_v41 = vmul.f32 %v48_v37, %v48_v37  ;;  %v173_v42 = vmul.f32 %v171_v38, %v171_v38 }
  0x21   :  { %v58_v43 = vrot.slane %v51_v39, 4  ;;  %v181_v44 = vrot.slane %v174_v40, 4 }
  0x22   :  { %v52_v45 = vrot.slane %v50_v41, 4  ;;  %v175_v46 = vrot.slane %v173_v42, 4 }
  0x23   :  { %v59_v47 = vadd.f32 %v58_v43, %v51_v39  ;;  %v182_v48 = vadd.f32 %v181_v44, %v174_v40 }
  0x24   :  { %v53_v49 = vadd.f32 %v52_v45, %v50_v41  ;;  %v176_v50 = vadd.f32 %v175_v46, %v173_v42 }
  0x25   :  { %v60_v51 = vrot.slane %v59_v47, 2  ;;  %v183_v52 = vrot.slane %v182_v48, 2 }
  0x26   :  { %v54_v53 = vrot.slane %v53_v49, 2  ;;  %v177_v54 = vrot.slane %v176_v50, 2 }
  0x27   :  { %v61_v55 = vadd.f32 %v60_v51, %v59_v47  ;;  %v184_v56 = vadd.f32 %v183_v52, %v182_v48 }
  0x28   :  { %v55_v57 = vadd.f32 %v54_v53, %v53_v49  ;;  %v178_v58 = vadd.f32 %v177_v54, %v176_v50 }
  0x29   :  { %v62_v59 = vrot.slane %v61_v55, 1  ;;  %v185_v60 = vrot.slane %v184_v56, 1 }
  0x2a   :  { %v56_v61 = vrot.slane %v55_v57, 1  ;;  %v179_v62 = vrot.slane %v178_v58, 1 }
  0x2b   :  { %v63_v63 = vadd.f32 %v62_v59, %v61_v55  ;;  %v186_v0 = vadd.f32 %v185_v60, %v184_v56 }
  0x2c   :  { %v57_v1 = vadd.f32 %v56_v61, %v55_v57  ;;  %v180_v2 = vadd.f32 %v179_v62, %v178_v58 }
  0x2d   :  { %v65_v3 = vmul.f32 0.125, %v63_v63  ;;  %v188_v4 = vmul.f32 0.125, %v186_v0 }
  0x2e   :  { %v64_v5 = vmul.f32 0.125, %v57_v1  ;;  %v187_v6 = vmul.f32 0.125, %v180_v2 }
  0x2f   :  { %v67_v7 = vadd.f32 1e-05, %v65_v3  ;;  %v190_v8 = vadd.f32 1e-05, %v188_v4 }
  0x30   :  { %v66_v9 = vadd.f32 1e-05, %v64_v5  ;;  %v189_v10 = vadd.f32 1e-05, %v187_v6 }
  0x31   :  { %295 = vrsqrt.f32 %v67_v7 }
  0x32   :  { %297 = vrsqrt.f32 %v190_v8 }
  0x33   :  { %299 = vrsqrt.f32 %v66_v9 }
  0x34   :  { %301 = vrsqrt.f32 %v189_v10 }
  0x3e   :  { %v296_v11 = vpop.eup %295 }
  0x3f   :  { %v298_v12 = vpop.eup %297  ;;  %v71_v13 = vmul.f32 %v296_v11, %v49_v35 }
  0x40   :  { %v300_v14 = vpop.eup %299  ;;  %v194_v15 = vmul.f32 %v298_v12, %v172_v36 }
  0x41   :  { %v302_v16 = vpop.eup %301  ;;  %111 = vmatprep.subr.mxu0 %v71_v13  ;;  %v70_v17 = vmul.f32 %v300_v14, %v48_v37 }
  0x42   :  { %225 = vmatprep.subr.mxu1 %v194_v15  ;;  %v193_v19 = vmul.f32 %v302_v16, %v171_v38 }
  0x43   :  { %112 = vmatpush1.msra.mxu0 %v70_v17 }
  0x44   :  { %226 = vmatpush1.msra.mxu1 %v193_v19  ;;  %286 = vmatmul.mubr.msk.f32.vlgmr.msra.gmra.mxu0 %vm77_vm0, %v29_v18 }
  0x45   :  { %287 = vmatmul.mubr.msk.f32.vlgmr.msra.gmra.mxu1 %vm77_vm0, %v29_v18 }
  0x8c   :  { %v75_v20 = vpop.permute.xlu0 %74 }
 0x104   :  { %v147_v21 = vpop.f32.mrf.mxu0 }
 0x105   :  { %v148_v22 = vadd.f32 %v147_v21, %v75_v20  ;;  %v261_v23 = vpop.f32.mrf.mxu1 }
 0x106   :  { %v262_v24 = vadd.f32 %v261_v23, %v75_v20  ;;  %v149_v25 = vpop.f32.mrf.mxu0 }
 0x107   :  { %152 = vst [vmem:[#allocation5] sm:$0xff] %v148_v22  ;;  %v150_v26 = vadd.f32 %v149_v25, %v75_v20  ;;  %v263_v27 = vpop.f32.mrf.mxu1 }
 0x108   :  { %267 = vst [vmem:[#allocation5 + $0x10] sm:$0xff] %v262_v24  ;;  %v264_v28 = vadd.f32 %v263_v27, %v75_v20 }
 0x109   :  { %153 = vst [vmem:[#allocation5 + $0x8] sm:$0xff] %v150_v26 }
 0x10a   :  { %268 = vst [vmem:[#allocation5 + $0x18] sm:$0xff] %v264_v28 }
 0x10b   :  { %334 = shalt.err (!%p331_p9)
}
 0x10c   :  { %280 = dma.vmem_to_hbm [thread:$0]  %s275_s22, 512, %s394_s3, [#allocation4], %s348_s15, %s348_s15, %s349_s16  }
 0x10d   :  { %345 = dma.done.wait [#allocation4], 512  }
 0x10e   :  { %346 = vsyncadd [#allocation4], 4294966784 }
 0x10f   :  { %284 = vsyncpa [#allocation3], 1 }
 0x110   :  { %285 = vsyncpa [#allocation4], 1 }

// kernel: tpu_custom_call.1
= control target key start
LH: loop header
LB: loop body
LE: loop exit
PB: predicated region body
PF: predicated region fallthrough
CT: control target
= control target key end

     0   :  { %8 = vsyncpa [#allocation3], 0  ;;  %s391_s0 = inlined_call_operand.hbm [shape: f32[2,8,256], index: 0, kind: input, shape index: {}]   ;;  %s392_s1 = inlined_call_operand.vmem [shape: f32[8,8], index: 1, kind: input, shape index: {}]   ;;  %s393_s2 = inlined_call_operand.vmem [shape: f32[8,1], index: 2, kind: input, shape index: {}]   ;;  %s394_s3 = inlined_call_operand.hbm [shape: f32[2,8,256], index: 3, kind: output, shape index: {}]  }
   0x1   :  { %9 = vsyncpa [#allocation4], 0  ;;  %s347_s12 = smov [#allocation2]  }
   0x2   :  { %s15_s13 = sshll.u32 %s347_s12, 4  ;;  %s16_s13 = int_to_ptr.vmem [resolvable:$true] %s15_s13 }
   0x3   :  { %s311_s14 = scalar_lea.vmem %s16_s13, 512  ;;  %p316_p1 = scmp.lt.s32.totalorder %s16_s13, %s16_s13 }
   0x4   :  { %p312_p0 = scmp.ne.s32.totalorder %s16_s13, %s311_s14  ;;  %p317_p2 = scmp.lt.s32.totalorder %s311_s14, %s311_s14 }
   0x6   :  { %p318_p3 = por %p317_p2, %p316_p1 }
   0x8   :  { %p319_p4 = pnand %p318_p3, %p312_p0 }
   0xa   :  { %322 = shalt.err (!%p319_p4)
}
   0xb   :  { %s348_s15 = smov 256   ;;  %s349_s16 = smov 16  }
   0xc   :  { %21 = dma.hbm_to_vmem [thread:$0]  %s391_s0, 512, %s16_s13, [#allocation3], %s348_s15, %s348_s15, %s349_s16  }
   0xd   :  { %343 = dma.done.wait [#allocation3], 512  }
   0xe   :  { %344 = vsyncadd [#allocation3], 4294966784  ;;  %v350_v0 = vmov 0.0   ;;  %v351_v1 = vmov 0   ;;  %v32_v2 = vld [vmem:[#allocation2 + $0x8] sm:$0xff]  ;;  %v156_v3 = vld [vmem:[#allocation2 + $0x18] sm:$0xff] }
   0xf   :  { %145 = vmatprep.mubr.f32.mxu0 %v350_v0  ;;  %259 = vmatprep.mubr.f32.mxu1 %v350_v0  ;;  %v31_v4 = vld [vmem:[#allocation2] sm:$0xff]  ;;  %v39_v5 = vrot.slane %v32_v2, 4  ;;  %v163_v6 = vrot.slane %v156_v3, 4  ;;  %v155_v8 = vld [vmem:[#allocation2 + $0x10] sm:$0xff]  ;;  %vm77_vm0 = vcmask 64512   ;;  %s352_s21 = smov [#allocation5]  }
  0x10   :  { %294 = vset.pattern.permute.xlu0 %v351_v1  ;;  %v33_v7 = vrot.slane %v31_v4, 4  ;;  %v30_v9 = vld [vmem:[%s393_s2] sm:$0xff]  ;;  %v157_v10 = vrot.slane %v155_v8, 4  ;;  %s274_s22 = sshll.u32 %s352_s21, 4  ;;  %s275_s22 = int_to_ptr.vmem [resolvable:$true] %s274_s22 }
  0x11   :  { %74 = vperm.xlu0 %294, %v30_v9   ;;  %v40_v11 = vadd.f32 %v39_v5, %v32_v2  ;;  %v164_v12 = vadd.f32 %v163_v6, %v156_v3  ;;  %p328_p6 = scmp.lt.s32.totalorder %s275_s22, %s275_s22 }
  0x12   :  { %v34_v13 = vadd.f32 %v33_v7, %v31_v4  ;;  %v158_v14 = vadd.f32 %v157_v10, %v155_v8 }
  0x13   :  { %v41_v15 = vrot.slane %v40_v11, 2  ;;  %v165_v16 = vrot.slane %v164_v12, 2 }
  0x14   :  { %v35_v17 = vrot.slane %v34_v13, 2  ;;  %v159_v18 = vrot.slane %v158_v14, 2 }
  0x15   :  { %v42_v19 = vadd.f32 %v41_v15, %v40_v11  ;;  %v166_v20 = vadd.f32 %v165_v16, %v164_v12 }
  0x16   :  { %v36_v21 = vadd.f32 %v35_v17, %v34_v13  ;;  %v160_v22 = vadd.f32 %v159_v18, %v158_v14  ;;  %v29_v18 = vld [vmem:[%s392_s1] sm:$0xff]  ;;  %s323_s1 = scalar_lea.vmem %s275_s22, 512 }
  0x17   :  { %v43_v23 = vrot.slane %v42_v19, 1  ;;  %v167_v24 = vrot.slane %v166_v20, 1  ;;  %p324_p5 = scmp.ne.s32.totalorder %s275_s22, %s323_s1  ;;  %p329_p7 = scmp.lt.s32.totalorder %s323_s1, %s323_s1 }
  0x18   :  { %v37_v25 = vrot.slane %v36_v21, 1  ;;  %v161_v26 = vrot.slane %v160_v22, 1 }
  0x19   :  { %v44_v27 = vadd.f32 %v43_v23, %v42_v19  ;;  %v168_v28 = vadd.f32 %v167_v24, %v166_v20  ;;  %p330_p8 = por %p329_p7, %p328_p6 }
  0x1a   :  { %v38_v29 = vadd.f32 %v37_v25, %v36_v21  ;;  %v162_v30 = vadd.f32 %v161_v26, %v160_v22 }
  0x1b   :  { %v47_v31 = vmul.f32 0.125, %v44_v27  ;;  %v170_v32 = vmul.f32 0.125, %v168_v28  ;;  %p331_p9 = pnand %p330_p8, %p324_p5 }
  0x1c   :  { %v46_v33 = vmul.f32 0.125, %v38_v29  ;;  %v169_v34 = vmul.f32 0.125, %v162_v30 }
  0x1d   :  { %v49_v35 = vsub.f32 %v32_v2, %v47_v31  ;;  %v172_v36 = vsub.f32 %v156_v3, %v170_v32 }
  0x1e   :  { %v48_v37 = vsub.f32 %v31_v4, %v46_v33  ;;  %v171_v38 = vsub.f32 %v155_v8, %v169_v34 }
  0x1f   :  { %v51_v39 = vmul.f32 %v49_v35, %v49_v35  ;;  %v174_v40 = vmul.f32 %v172_v36, %v172_v36 }
  0x20   :  { %v50_v41 = vmul.f32 %v48_v37, %v48_v37  ;;  %v173_v42 = vmul.f32 %v171_v38, %v171_v38 }
  0x21   :  { %v58_v43 = vrot.slane %v51_v39, 4  ;;  %v181_v44 = vrot.slane %v174_v40, 4 }
  0x22   :  { %v52_v45 = vrot.slane %v50_v41, 4  ;;  %v175_v46 = vrot.slane %v173_v42, 4 }
  0x23   :  { %v59_v47 = vadd.f32 %v58_v43, %v51_v39  ;;  %v182_v48 = vadd.f32 %v181_v44, %v174_v40 }
  0x24   :  { %v53_v49 = vadd.f32 %v52_v45, %v50_v41  ;;  %v176_v50 = vadd.f32 %v175_v46, %v173_v42 }
  0x25   :  { %v60_v51 = vrot.slane %v59_v47, 2  ;;  %v183_v52 = vrot.slane %v182_v48, 2 }
  0x26   :  { %v54_v53 = vrot.slane %v53_v49, 2  ;;  %v177_v54 = vrot.slane %v176_v50, 2 }
  0x27   :  { %v61_v55 = vadd.f32 %v60_v51, %v59_v47  ;;  %v184_v56 = vadd.f32 %v183_v52, %v182_v48 }
  0x28   :  { %v55_v57 = vadd.f32 %v54_v53, %v53_v49  ;;  %v178_v58 = vadd.f32 %v177_v54, %v176_v50 }
  0x29   :  { %v62_v59 = vrot.slane %v61_v55, 1  ;;  %v185_v60 = vrot.slane %v184_v56, 1 }
  0x2a   :  { %v56_v61 = vrot.slane %v55_v57, 1  ;;  %v179_v62 = vrot.slane %v178_v58, 1 }
  0x2b   :  { %v63_v63 = vadd.f32 %v62_v59, %v61_v55  ;;  %v186_v0 = vadd.f32 %v185_v60, %v184_v56 }
  0x2c   :  { %v57_v1 = vadd.f32 %v56_v61, %v55_v57  ;;  %v180_v2 = vadd.f32 %v179_v62, %v178_v58 }
  0x2d   :  { %v65_v3 = vmul.f32 0.125, %v63_v63  ;;  %v188_v4 = vmul.f32 0.125, %v186_v0 }
  0x2e   :  { %v64_v5 = vmul.f32 0.125, %v57_v1  ;;  %v187_v6 = vmul.f32 0.125, %v180_v2 }
  0x2f   :  { %v67_v7 = vadd.f32 1e-05, %v65_v3  ;;  %v190_v8 = vadd.f32 1e-05, %v188_v4 }
  0x30   :  { %v66_v9 = vadd.f32 1e-05, %v64_v5  ;;  %v189_v10 = vadd.f32 1e-05, %v187_v6 }
  0x31   :  { %295 = vrsqrt.f32 %v67_v7 }
  0x32   :  { %297 = vrsqrt.f32 %v190_v8 }
  0x33   :  { %299 = vrsqrt.f32 %v66_v9 }
  0x34   :  { %301 = vrsqrt.f32 %v189_v10 }
  0x3e   :  { %v296_v11 = vpop.eup %295 }
  0x3f   :  { %v298_v12 = vpop.eup %297  ;;  %v71_v13 = vmul.f32 %v296_v11, %v49_v35 }
  0x40   :  { %v300_v14 = vpop.eup %299  ;;  %v194_v15 = vmul.f32 %v298_v12, %v172_v36 }
  0x41   :  { %v302_v16 = vpop.eup %301  ;;  %111 = vmatprep.subr.mxu0 %v71_v13  ;;  %v70_v17 = vmul.f32 %v300_v14, %v48_v37 }
  0x42   :  { %225 = vmatprep.subr.mxu1 %v194_v15  ;;  %v193_v19 = vmul.f32 %v302_v16, %v171_v38 }
  0x43   :  { %112 = vmatpush1.msra.mxu0 %v70_v17 }
  0x44   :  { %226 = vmatpush1.msra.mxu1 %v193_v19  ;;  %286 = vmatmul.mubr.msk.f32.vlgmr.msra.gmra.mxu0 %vm77_vm0, %v29_v18 }
  0x45   :  { %287 = vmatmul.mubr.msk.f32.vlgmr.msra.gmra.mxu1 %vm77_vm0, %v29_v18 }
  0x8c   :  { %v75_v20 = vpop.permute.xlu0 %74 }
 0x104   :  { %v147_v21 = vpop.f32.mrf.mxu0 }
 0x105   :  { %v148_v22 = vadd.f32 %v147_v21, %v75_v20  ;;  %v261_v23 = vpop.f32.mrf.mxu1 }
 0x106   :  { %v262_v24 = vadd.f32 %v261_v23, %v75_v20  ;;  %v149_v25 = vpop.f32.mrf.mxu0 }
 0x107   :  { %152 = vst [vmem:[#allocation5] sm:$0xff] %v148_v22  ;;  %v150_v26 = vadd.f32 %v149_v25, %v75_v20  ;;  %v263_v27 = vpop.f32.mrf.mxu1 }
 0x108   :  { %267 = vst [vmem:[#allocation5 + $0x10] sm:$0xff] %v262_v24  ;;  %v264_v28 = vadd.f32 %v263_v27, %v75_v20 }
 0x109   :  { %153 = vst [vmem:[#allocation5 + $0x8] sm:$0xff] %v150_v26 }
 0x10a   :  { %268 = vst [vmem:[#allocation5 + $0x18] sm:$0xff] %v264_v28 }
 0x10b   :  { %334 = shalt.err (!%p331_p9)
}
 0x10c   :  { %280 = dma.vmem_to_hbm [thread:$0]  %s275_s22, 512, %s394_s3, [#allocation4], %s348_s15, %s348_s15, %s349_s16  }
 0x10d   :  { %345 = dma.done.wait [#allocation4], 512  }
 0x10e   :  { %346 = vsyncadd [#allocation4], 4294966784 }
 0x10f   :  { %284 = vsyncpa [#allocation3], 1 }
 0x110   :  { %285 = vsyncpa [#allocation4], 1 }

</bundles_post_ra>
